<compile_context>
chip_gen: v7x
topology: tpu7x:2x2x1
jax: 0.10.0
libtpu: 0.0.40
codegen_flags: <defaults>
</compile_context>

<pallas_src>
import math
import functools

import jax
import jax.numpy as jnp
from jax import lax
from jax.experimental import pallas as pl
from jax.experimental.pallas import tpu as pltpu


_DN = (((1,), (0,)), ((), ()))   # contract lhs last dim with rhs first dim


# ----------------------------------------------------------------------------
# Shared body: per-head softmax attention + head-join + single output matmul.
#   q/k/v : (S, D) float32 activations (1/sqrt(dk) already folded into q)
#   wo_t  : (D, D) Wo^T in MXU dtype
#   bo    : (1, D) float32
# Writes o_ref[0] = (S, D) and s_ref[0, h] = (S, S) per head.
# ----------------------------------------------------------------------------
def _attend_heads(q, k, v, wo_t, bo, o_ref, s_ref, *, num_heads, dim_k, mxu_dtype):
    blended = []
    for h in range(num_heads):                      # H is tiny -> static unroll
        sl = slice(h * dim_k, (h + 1) * dim_k)
        q_h = q[:, sl].astype(mxu_dtype)            # (S, dk)
        k_h = k[:, sl].astype(mxu_dtype)
        v_h = v[:, sl].astype(mxu_dtype)

        # logits = q_h @ k_h^T : contract dk of both operands (no transpose).
        logits = lax.dot_general(q_h, k_h, (((1,), (1,)), ((), ())),
                                 preferred_element_type=jnp.float32)

        # Softmax kept in f32 on VPU/EUP.
        m = jnp.max(logits, axis=-1, keepdims=True)
        e = jnp.exp(logits - m)
        denom = jnp.sum(e, axis=-1, keepdims=True)
        r = pl.reciprocal(denom, approx=True)       # EUP slot (co-issues)
        r = r * (2.0 - denom * r)                   # one Newton step -> ~f32 exact
        p = e * r                                   # (S, S) probabilities

        s_ref[0, h] = p.astype(s_ref.dtype)

        # blended_h = p @ v_h   (S, dk), f32 accumulation
        blended.append(lax.dot_general(p.astype(mxu_dtype), v_h, _DN,
                                       preferred_element_type=jnp.float32))

    # Lane-join the heads in-register, then ONE K=D matmul against Wo^T
    # (fills the systolic depth; accumulation happens inside the MXU).
    joined = jnp.concatenate(blended, axis=-1).astype(mxu_dtype)      # (S, D)
    out = lax.dot_general(joined, wo_t, _DN,
                          preferred_element_type=jnp.float32) + bo    # (S, D)
    o_ref[0] = out.astype(o_ref.dtype)


# ----------------------------------------------------------------------------
# Self-attention kernel (query is key is value): one fused QKV matmul.
# ----------------------------------------------------------------------------
def _mha_self_kernel(x_ref, wqkv_ref, bqkv_ref, wo_ref, bo_ref, o_ref, s_ref,
                     *, num_heads, dim_k, mxu_dtype):
    D = num_heads * dim_k
    w = wqkv_ref[...]                               # (D, 3D), resident
    x = x_ref[0].astype(w.dtype)                    # (S, D)
    # ONE (S,D)@(D,3D) MXU pass, f32 accumulate, f32 bias add.
    qkv = lax.dot_general(x, w, _DN, preferred_element_type=jnp.float32) + bqkv_ref[...]
    q = qkv[:, 0:D]
    k = qkv[:, D:2 * D]
    v = qkv[:, 2 * D:3 * D]
    _attend_heads(q, k, v, wo_ref[...], bo_ref[...], o_ref, s_ref,
                  num_heads=num_heads, dim_k=dim_k, mxu_dtype=mxu_dtype)


# ----------------------------------------------------------------------------
# Cross-attention kernel (distinct query / key / value activations).
# ----------------------------------------------------------------------------
def _mha_cross_kernel(xq_ref, xk_ref, xv_ref, wqkv_ref, bqkv_ref, wo_ref, bo_ref,
                      o_ref, s_ref, *, num_heads, dim_k, mxu_dtype):
    D = num_heads * dim_k
    w = wqkv_ref[...]                               # (D, 3D)
    b = bqkv_ref[...]                               # (1, 3D) f32
    q = lax.dot_general(xq_ref[0].astype(w.dtype), w[:, 0:D], _DN,
                        preferred_element_type=jnp.float32) + b[:, 0:D]
    k = lax.dot_general(xk_ref[0].astype(w.dtype), w[:, D:2 * D], _DN,
                        preferred_element_type=jnp.float32) + b[:, D:2 * D]
    v = lax.dot_general(xv_ref[0].astype(w.dtype), w[:, 2 * D:3 * D], _DN,
                        preferred_element_type=jnp.float32) + b[:, 2 * D:3 * D]
    _attend_heads(q, k, v, wo_ref[...], bo_ref[...], o_ref, s_ref,
                  num_heads=num_heads, dim_k=dim_k, mxu_dtype=mxu_dtype)


# ----------------------------------------------------------------------------
# Host-side, one-time parameter packing.
#   * Wq^T / Wk^T / Wv^T stacked lane-wise into a single (D, 3D) matrix.
#   * 1/sqrt(dk) folded into the Wq^T / bq slice.
#   * Weights stored in the MXU dtype (bf16 by default); biases stay f32.
# ----------------------------------------------------------------------------
def pack_params(params, num_heads, mxu_dtype=jnp.bfloat16):
    D = params["wq"].shape[0]
    dk = D // num_heads
    scale = 1.0 / math.sqrt(dk)
    wqkv_t = jnp.concatenate(
        [params["wq"].T * scale, params["wk"].T, params["wv"].T], axis=1)    # (D, 3D)
    bqkv = jnp.concatenate(
        [params["bq"] * scale, params["bk"], params["bv"]])[None, :]         # (1, 3D)
    return {
        "wqkv_t": wqkv_t.astype(mxu_dtype),
        "bqkv": bqkv.astype(jnp.float32),
        "wo_t": params["wo"].T.astype(mxu_dtype),
        "bo": params["bo"][None, :].astype(jnp.float32),
    }


# ----------------------------------------------------------------------------
# Wrapper: single pallas_call over a (B,) grid.
# ----------------------------------------------------------------------------
def attention_forward(packed, query, key, value, num_heads, attention_mask=None):
    if attention_mask is not None:
        # TODO(synk): mask path not implemented (see header note).
        raise NotImplementedError("attention_mask is not supported")
    B, S, D = query.shape
    assert D % num_heads == 0
    dk = D // num_heads
    mxu_dtype = packed["wqkv_t"].dtype

    act_spec = pl.BlockSpec((1, S, D), lambda b: (b, 0, 0))
    weight_specs = [
        pl.BlockSpec((D, 3 * D), lambda b: (0, 0)),     # wqkv_t (resident)
        pl.BlockSpec((1, 3 * D), lambda b: (0, 0)),     # bqkv
        pl.BlockSpec((D, D), lambda b: (0, 0)),         # wo_t
        pl.BlockSpec((1, D), lambda b: (0, 0)),         # bo
    ]
    out_specs = (
        pl.BlockSpec((1, S, D), lambda b: (b, 0, 0)),
        pl.BlockSpec((1, num_heads, S, S), lambda b: (b, 0, 0, 0)),
    )
    out_shape = (
        jax.ShapeDtypeStruct((B, S, D), jnp.float32),
        jax.ShapeDtypeStruct((B, num_heads, S, S), jnp.float32),
    )
    cparams = pltpu.CompilerParams(dimension_semantics=("parallel",))

    if key is query and value is query:
        # Self-attention fast path: the activation is DMA'd ONCE per grid step
        # and the three projections become a single (S,D)@(D,3D) matmul.
        kernel = functools.partial(_mha_self_kernel, num_heads=num_heads,
                                   dim_k=dk, mxu_dtype=mxu_dtype)
        return pl.pallas_call(
            kernel, grid=(B,),
            in_specs=[act_spec] + weight_specs,
            out_specs=out_specs, out_shape=out_shape, compiler_params=cparams,
        )(query, packed["wqkv_t"], packed["bqkv"], packed["wo_t"], packed["bo"])

    kernel = functools.partial(_mha_cross_kernel, num_heads=num_heads,
                               dim_k=dk, mxu_dtype=mxu_dtype)
    return pl.pallas_call(
        kernel, grid=(B,),
        in_specs=[act_spec, act_spec, act_spec] + weight_specs,
        out_specs=out_specs, out_shape=out_shape, compiler_params=cparams,
    )(query, key, value, packed["wqkv_t"], packed["bqkv"], packed["wo_t"], packed["bo"])


# ----------------------------------------------------------------------------
# Pure-JAX reference (mirrors the PyTorch module) for validation.
# ----------------------------------------------------------------------------
def reference_forward(params, query, key, value, num_heads):
    B, S, D = query.shape
    dk = D // num_heads

    def proj(x, w, b):
        y = x @ w.T + b
        return jnp.transpose(y.reshape(B, S, num_heads, dk), (0, 2, 1, 3))

    q = proj(query, params["wq"], params["bq"])
    k = proj(key, params["wk"], params["bk"])
    v = proj(value, params["wv"], params["bv"])
    logits = jnp.einsum("bhqd,bhkd->bhqk", q, k) / math.sqrt(dk)
    p = jax.nn.softmax(logits, axis=-1)
    o = jnp.einsum("bhqk,bhkd->bhqd", p, v)
    o = jnp.transpose(o, (0, 2, 1, 3)).reshape(B, S, D)
    o = o @ params["wo"].T + params["bo"]
    return o, p


if __name__ == "__main__":
    # config: dim_embed=32, num_heads=4  ->  dim_k=8
    B, S, D, H = 2, 8, 32, 4

    key0 = jax.random.PRNGKey(0)
    keys = jax.random.split(key0, 12)
    bound = 1.0 / math.sqrt(D)  # nn.Linear default uniform bound

    params = {
        "wq": jax.random.uniform(keys[0], (D, D), jnp.float32, -bound, bound),
        "bq": jax.random.uniform(keys[1], (D,), jnp.float32, -bound, bound),
        "wk": jax.random.uniform(keys[2], (D, D), jnp.float32, -bound, bound),
        "bk": jax.random.uniform(keys[3], (D,), jnp.float32, -bound, bound),
        "wv": jax.random.uniform(keys[4], (D, D), jnp.float32, -bound, bound),
        "bv": jax.random.uniform(keys[5], (D,), jnp.float32, -bound, bound),
        "wo": jax.random.uniform(keys[6], (D, D), jnp.float32, -bound, bound),
        "bo": jax.random.uniform(keys[7], (D,), jnp.float32, -bound, bound),
    }

    query = jax.random.normal(keys[8], (B, S, D), jnp.float32)
    kin = jax.random.normal(keys[9], (B, S, D), jnp.float32)
    vin = jax.random.normal(keys[10], (B, S, D), jnp.float32)

    ref_out, ref_scores = reference_forward(params, query, kin, vin, H)

    # 1) Production path: bf16 MXU operands, f32 softmax/accumulation.
    packed_bf16 = pack_params(params, H, mxu_dtype=jnp.bfloat16)
    out, scores = attention_forward(packed_bf16, query, kin, vin, H)
    out = jax.block_until_ready(out)
    scores = jax.block_until_ready(scores)
    assert out.shape == (B, S, D) and scores.shape == (B, H, S, S)
    assert jnp.allclose(out, ref_out, rtol=3e-2, atol=3e-2)
    assert jnp.allclose(scores, ref_scores, rtol=3e-2, atol=3e-2)

    # 2) f32 MXU path: tight-tolerance correctness check (cross-attention).
    packed_f32 = pack_params(params, H, mxu_dtype=jnp.float32)
    out32, scores32 = attention_forward(packed_f32, query, kin, vin, H)
    out32 = jax.block_until_ready(out32)
    assert jnp.allclose(out32, ref_out, rtol=1e-4, atol=1e-4)
    assert jnp.allclose(scores32, ref_scores, rtol=1e-4, atol=1e-4)

    # 3) Self-attention fast path (single fused (S,D)@(D,3D) QKV matmul).
    out_self, scores_self = attention_forward(packed_f32, query, query, query, H)
    out_self = jax.block_until_ready(out_self)
    ref_out_s, ref_scores_s = reference_forward(params, query, query, query, H)
    assert jnp.allclose(out_self, ref_out_s, rtol=1e-4, atol=1e-4)
    assert jnp.allclose(scores_self, ref_scores_s, rtol=1e-4, atol=1e-4)

    print("KERNEL_OK")
</pallas_src>

<mosaic_0001>
module attributes {stable_mosaic.version = 11 : i64} {
  func.func @_mha_cross_kernel(%arg0: i32, %arg1: memref<1x8x32xf32, #tpu.memory_space<vmem>>, %arg2: memref<1x8x32xf32, #tpu.memory_space<vmem>>, %arg3: memref<1x8x32xf32, #tpu.memory_space<vmem>>, %arg4: memref<32x96xbf16, #tpu.memory_space<vmem>>, %arg5: memref<1x96xf32, #tpu.memory_space<vmem>>, %arg6: memref<32x32xbf16, #tpu.memory_space<vmem>>, %arg7: memref<1x32xf32, #tpu.memory_space<vmem>>, %arg8: memref<1x8x32xf32, #tpu.memory_space<vmem>>, %arg9: memref<1x4x8x8xf32, #tpu.memory_space<vmem>>) attributes {dimension_semantics = [#tpu.dimension_semantics<parallel>], iteration_bounds = array<i64: 2>, scalar_prefetch = 0 : i64, scratch_operands = 0 : i64, tpu.core_type = #tpu.core_type<tc>, window_params = [{transform_indices = @transform_0, window_bounds = array<i64: 1, 8, 32>}, {transform_indices = @transform_1, window_bounds = array<i64: 1, 8, 32>}, {transform_indices = @transform_2, window_bounds = array<i64: 1, 8, 32>}, {pipeline_mode = #tpu.pipeline_mode<synchronous>, transform_indices = @transform_3, window_bounds = array<i64: 32, 96>}, {pipeline_mode = #tpu.pipeline_mode<synchronous>, transform_indices = @transform_4, window_bounds = array<i64: 1, 96>}, {pipeline_mode = #tpu.pipeline_mode<synchronous>, transform_indices = @transform_5, window_bounds = array<i64: 32, 32>}, {pipeline_mode = #tpu.pipeline_mode<synchronous>, transform_indices = @transform_6, window_bounds = array<i64: 1, 32>}, {transform_indices = @transform_7, window_bounds = array<i64: 1, 8, 32>}, {transform_indices = @transform_8, window_bounds = array<i64: 1, 4, 8, 8>}]} {
    %c0 = arith.constant 0 : index
    %c0_0 = arith.constant 0 : index
    %0 = vector.load %arg4[%c0, %c0_0] : memref<32x96xbf16, #tpu.memory_space<vmem>>, vector<32x96xbf16>
    %c0_1 = arith.constant 0 : index
    %c0_2 = arith.constant 0 : index
    %1 = vector.load %arg5[%c0_1, %c0_2] : memref<1x96xf32, #tpu.memory_space<vmem>>, vector<1x96xf32>
    %c0_3 = arith.constant 0 : index
    %c0_4 = arith.constant 0 : index
    %c0_5 = arith.constant 0 : index
    %2 = vector.load %arg1[%c0_3, %c0_4, %c0_5] : memref<1x8x32xf32, #tpu.memory_space<vmem>>, vector<1x8x32xf32>
    %3 = vector.shape_cast %2 : vector<1x8x32xf32> to vector<8x32xf32>
    %4 = arith.truncf %3 : vector<8x32xf32> to vector<8x32xbf16>
    %5 = vector.extract_strided_slice %0 {offsets = [0, 0], sizes = [32, 32], strides = [1, 1]} : vector<32x96xbf16> to vector<32x32xbf16>
    %cst = arith.constant dense<0.000000e+00> : vector<8x32xf32>
    %6 = tpu.matmul %4, %5, %cst {dimension_numbers = #tpu.dot_dimension_numbers<[1], [0], [0], [1], [0, 0, 1, 1], [], []>} : vector<8x32xbf16>, vector<32x32xbf16>, vector<8x32xf32> -> vector<8x32xf32>
    %7 = vector.extract_strided_slice %1 {offsets = [0, 0], sizes = [1, 32], strides = [1, 1]} : vector<1x96xf32> to vector<1x32xf32>
    %8 = vector.broadcast %7 : vector<1x32xf32> to vector<8x32xf32>
    %9 = arith.addf %6, %8 : vector<8x32xf32>
    %c0_6 = arith.constant 0 : index
    %c0_7 = arith.constant 0 : index
    %c0_8 = arith.constant 0 : index
    %10 = vector.load %arg2[%c0_6, %c0_7, %c0_8] : memref<1x8x32xf32, #tpu.memory_space<vmem>>, vector<1x8x32xf32>
    %11 = vector.shape_cast %10 : vector<1x8x32xf32> to vector<8x32xf32>
    %12 = arith.truncf %11 : vector<8x32xf32> to vector<8x32xbf16>
    %13 = vector.extract_strided_slice %0 {offsets = [0, 32], sizes = [32, 32], strides = [1, 1]} : vector<32x96xbf16> to vector<32x32xbf16>
    %cst_9 = arith.constant dense<0.000000e+00> : vector<8x32xf32>
    %14 = tpu.matmul %12, %13, %cst_9 {dimension_numbers = #tpu.dot_dimension_numbers<[1], [0], [0], [1], [0, 0, 1, 1], [], []>} : vector<8x32xbf16>, vector<32x32xbf16>, vector<8x32xf32> -> vector<8x32xf32>
    %15 = vector.extract_strided_slice %1 {offsets = [0, 32], sizes = [1, 32], strides = [1, 1]} : vector<1x96xf32> to vector<1x32xf32>
    %16 = vector.broadcast %15 : vector<1x32xf32> to vector<8x32xf32>
    %17 = arith.addf %14, %16 : vector<8x32xf32>
    %c0_10 = arith.constant 0 : index
    %c0_11 = arith.constant 0 : index
    %c0_12 = arith.constant 0 : index
    %18 = vector.load %arg3[%c0_10, %c0_11, %c0_12] : memref<1x8x32xf32, #tpu.memory_space<vmem>>, vector<1x8x32xf32>
    %19 = vector.shape_cast %18 : vector<1x8x32xf32> to vector<8x32xf32>
    %20 = arith.truncf %19 : vector<8x32xf32> to vector<8x32xbf16>
    %21 = vector.extract_strided_slice %0 {offsets = [0, 64], sizes = [32, 32], strides = [1, 1]} : vector<32x96xbf16> to vector<32x32xbf16>
    %cst_13 = arith.constant dense<0.000000e+00> : vector<8x32xf32>
    %22 = tpu.matmul %20, %21, %cst_13 {dimension_numbers = #tpu.dot_dimension_numbers<[1], [0], [0], [1], [0, 0, 1, 1], [], []>} : vector<8x32xbf16>, vector<32x32xbf16>, vector<8x32xf32> -> vector<8x32xf32>
    %23 = vector.extract_strided_slice %1 {offsets = [0, 64], sizes = [1, 32], strides = [1, 1]} : vector<1x96xf32> to vector<1x32xf32>
    %24 = vector.broadcast %23 : vector<1x32xf32> to vector<8x32xf32>
    %25 = arith.addf %22, %24 : vector<8x32xf32>
    %c0_14 = arith.constant 0 : index
    %c0_15 = arith.constant 0 : index
    %26 = vector.load %arg6[%c0_14, %c0_15] : memref<32x32xbf16, #tpu.memory_space<vmem>>, vector<32x32xbf16>
    %c0_16 = arith.constant 0 : index
    %c0_17 = arith.constant 0 : index
    %27 = vector.load %arg7[%c0_16, %c0_17] : memref<1x32xf32, #tpu.memory_space<vmem>>, vector<1x32xf32>
    %28 = vector.extract_strided_slice %9 {offsets = [0, 0], sizes = [8, 8], strides = [1, 1]} : vector<8x32xf32> to vector<8x8xf32>
    %29 = arith.truncf %28 : vector<8x8xf32> to vector<8x8xbf16>
    %30 = vector.extract_strided_slice %17 {offsets = [0, 0], sizes = [8, 8], strides = [1, 1]} : vector<8x32xf32> to vector<8x8xf32>
    %31 = arith.truncf %30 : vector<8x8xf32> to vector<8x8xbf16>
    %32 = vector.extract_strided_slice %25 {offsets = [0, 0], sizes = [8, 8], strides = [1, 1]} : vector<8x32xf32> to vector<8x8xf32>
    %33 = arith.truncf %32 : vector<8x8xf32> to vector<8x8xbf16>
    %cst_18 = arith.constant dense<0.000000e+00> : vector<8x8xf32>
    %34 = tpu.matmul %29, %31, %cst_18 {dimension_numbers = #tpu.dot_dimension_numbers<[1], [1], [0], [0], [0, 0, 1, 0], [], []>} : vector<8x8xbf16>, vector<8x8xbf16>, vector<8x8xf32> -> vector<8x8xf32>
    %cst_19 = arith.constant dense<0xFF800000> : vector<8xf32>
    %35 = vector.multi_reduction <maximumf>, %34, %cst_19 [1] : vector<8x8xf32> to vector<8xf32>
    %36 = vector.shape_cast %35 : vector<8xf32> to vector<8x1xf32>
    %37 = vector.broadcast %36 : vector<8x1xf32> to vector<8x8xf32>
    %38 = arith.subf %34, %37 : vector<8x8xf32>
    %39 = math.exp %38 : vector<8x8xf32>
    %cst_20 = arith.constant dense<0.000000e+00> : vector<8xf32>
    %40 = vector.multi_reduction <add>, %39, %cst_20 [1] : vector<8x8xf32> to vector<8xf32>
    %41 = vector.shape_cast %40 : vector<8xf32> to vector<8x1xf32>
    %42 = tpu.reciprocal %41 {approx = true} : vector<8x1xf32> -> vector<8x1xf32>
    %43 = arith.mulf %41, %42 : vector<8x1xf32>
    %cst_21 = arith.constant 2.000000e+00 : f32
    %44 = vector.broadcast %cst_21 : f32 to vector<8x1xf32>
    %45 = arith.subf %44, %43 : vector<8x1xf32>
    %46 = arith.mulf %42, %45 : vector<8x1xf32>
    %47 = vector.broadcast %46 : vector<8x1xf32> to vector<8x8xf32>
    %48 = arith.mulf %39, %47 : vector<8x8xf32>
    %c0_22 = arith.constant 0 : index
    %c0_23 = arith.constant 0 : index
    %c0_24 = arith.constant 0 : index
    %c0_25 = arith.constant 0 : index
    %49 = vector.load %arg9[%c0_22, %c0_23, %c0_24, %c0_25] : memref<1x4x8x8xf32, #tpu.memory_space<vmem>>, vector<1x1x8x8xf32>
    %50 = vector.shape_cast %49 : vector<1x1x8x8xf32> to vector<8x8xf32>
    %51 = vector.shape_cast %48 : vector<8x8xf32> to vector<1x1x8x8xf32>
    tpu.vector_store %arg9[%c0_22, %c0_23, %c0_24, %c0_25], %51 {strides = array<i32>} : memref<1x4x8x8xf32, #tpu.memory_space<vmem>>, vector<1x1x8x8xf32>,
    %52 = arith.truncf %48 : vector<8x8xf32> to vector<8x8xbf16>
    %cst_26 = arith.constant dense<0.000000e+00> : vector<8x8xf32>
    %53 = tpu.matmul %52, %33, %cst_26 {dimension_numbers = #tpu.dot_dimension_numbers<[1], [0], [0], [1], [0, 0, 1, 1], [], []>} : vector<8x8xbf16>, vector<8x8xbf16>, vector<8x8xf32> -> vector<8x8xf32>
    %54 = vector.extract_strided_slice %9 {offsets = [0, 8], sizes = [8, 8], strides = [1, 1]} : vector<8x32xf32> to vector<8x8xf32>
    %55 = arith.truncf %54 : vector<8x8xf32> to vector<8x8xbf16>
    %56 = vector.extract_strided_slice %17 {offsets = [0, 8], sizes = [8, 8], strides = [1, 1]} : vector<8x32xf32> to vector<8x8xf32>
    %57 = arith.truncf %56 : vector<8x8xf32> to vector<8x8xbf16>
    %58 = vector.extract_strided_slice %25 {offsets = [0, 8], sizes = [8, 8], strides = [1, 1]} : vector<8x32xf32> to vector<8x8xf32>
    %59 = arith.truncf %58 : vector<8x8xf32> to vector<8x8xbf16>
    %cst_27 = arith.constant dense<0.000000e+00> : vector<8x8xf32>
    %60 = tpu.matmul %55, %57, %cst_27 {dimension_numbers = #tpu.dot_dimension_numbers<[1], [1], [0], [0], [0, 0, 1, 0], [], []>} : vector<8x8xbf16>, vector<8x8xbf16>, vector<8x8xf32> -> vector<8x8xf32>
    %cst_28 = arith.constant dense<0xFF800000> : vector<8xf32>
    %61 = vector.multi_reduction <maximumf>, %60, %cst_28 [1] : vector<8x8xf32> to vector<8xf32>
    %62 = vector.shape_cast %61 : vector<8xf32> to vector<8x1xf32>
    %63 = vector.broadcast %62 : vector<8x1xf32> to vector<8x8xf32>
    %64 = arith.subf %60, %63 : vector<8x8xf32>
    %65 = math.exp %64 : vector<8x8xf32>
    %cst_29 = arith.constant dense<0.000000e+00> : vector<8xf32>
    %66 = vector.multi_reduction <add>, %65, %cst_29 [1] : vector<8x8xf32> to vector<8xf32>
    %67 = vector.shape_cast %66 : vector<8xf32> to vector<8x1xf32>
    %68 = tpu.reciprocal %67 {approx = true} : vector<8x1xf32> -> vector<8x1xf32>
    %69 = arith.mulf %67, %68 : vector<8x1xf32>
    %cst_30 = arith.constant 2.000000e+00 : f32
    %70 = vector.broadcast %cst_30 : f32 to vector<8x1xf32>
    %71 = arith.subf %70, %69 : vector<8x1xf32>
    %72 = arith.mulf %68, %71 : vector<8x1xf32>
    %73 = vector.broadcast %72 : vector<8x1xf32> to vector<8x8xf32>
    %74 = arith.mulf %65, %73 : vector<8x8xf32>
    %c0_31 = arith.constant 0 : index
    %c1 = arith.constant 1 : index
    %c0_32 = arith.constant 0 : index
    %c0_33 = arith.constant 0 : index
    %75 = vector.load %arg9[%c0_31, %c1, %c0_32, %c0_33] : memref<1x4x8x8xf32, #tpu.memory_space<vmem>>, vector<1x1x8x8xf32>
    %76 = vector.shape_cast %75 : vector<1x1x8x8xf32> to vector<8x8xf32>
    %77 = vector.shape_cast %74 : vector<8x8xf32> to vector<1x1x8x8xf32>
    tpu.vector_store %arg9[%c0_31, %c1, %c0_32, %c0_33], %77 {strides = array<i32>} : memref<1x4x8x8xf32, #tpu.memory_space<vmem>>, vector<1x1x8x8xf32>,
    %78 = arith.truncf %74 : vector<8x8xf32> to vector<8x8xbf16>
    %cst_34 = arith.constant dense<0.000000e+00> : vector<8x8xf32>
    %79 = tpu.matmul %78, %59, %cst_34 {dimension_numbers = #tpu.dot_dimension_numbers<[1], [0], [0], [1], [0, 0, 1, 1], [], []>} : vector<8x8xbf16>, vector<8x8xbf16>, vector<8x8xf32> -> vector<8x8xf32>
    %80 = vector.extract_strided_slice %9 {offsets = [0, 16], sizes = [8, 8], strides = [1, 1]} : vector<8x32xf32> to vector<8x8xf32>
    %81 = arith.truncf %80 : vector<8x8xf32> to vector<8x8xbf16>
    %82 = vector.extract_strided_slice %17 {offsets = [0, 16], sizes = [8, 8], strides = [1, 1]} : vector<8x32xf32> to vector<8x8xf32>
    %83 = arith.truncf %82 : vector<8x8xf32> to vector<8x8xbf16>
    %84 = vector.extract_strided_slice %25 {offsets = [0, 16], sizes = [8, 8], strides = [1, 1]} : vector<8x32xf32> to vector<8x8xf32>
    %85 = arith.truncf %84 : vector<8x8xf32> to vector<8x8xbf16>
    %cst_35 = arith.constant dense<0.000000e+00> : vector<8x8xf32>
    %86 = tpu.matmul %81, %83, %cst_35 {dimension_numbers = #tpu.dot_dimension_numbers<[1], [1], [0], [0], [0, 0, 1, 0], [], []>} : vector<8x8xbf16>, vector<8x8xbf16>, vector<8x8xf32> -> vector<8x8xf32>
    %cst_36 = arith.constant dense<0xFF800000> : vector<8xf32>
    %87 = vector.multi_reduction <maximumf>, %86, %cst_36 [1] : vector<8x8xf32> to vector<8xf32>
    %88 = vector.shape_cast %87 : vector<8xf32> to vector<8x1xf32>
    %89 = vector.broadcast %88 : vector<8x1xf32> to vector<8x8xf32>
    %90 = arith.subf %86, %89 : vector<8x8xf32>
    %91 = math.exp %90 : vector<8x8xf32>
    %cst_37 = arith.constant dense<0.000000e+00> : vector<8xf32>
    %92 = vector.multi_reduction <add>, %91, %cst_37 [1] : vector<8x8xf32> to vector<8xf32>
    %93 = vector.shape_cast %92 : vector<8xf32> to vector<8x1xf32>
    %94 = tpu.reciprocal %93 {approx = true} : vector<8x1xf32> -> vector<8x1xf32>
    %95 = arith.mulf %93, %94 : vector<8x1xf32>
    %cst_38 = arith.constant 2.000000e+00 : f32
    %96 = vector.broadcast %cst_38 : f32 to vector<8x1xf32>
    %97 = arith.subf %96, %95 : vector<8x1xf32>
    %98 = arith.mulf %94, %97 : vector<8x1xf32>
    %99 = vector.broadcast %98 : vector<8x1xf32> to vector<8x8xf32>
    %100 = arith.mulf %91, %99 : vector<8x8xf32>
    %c0_39 = arith.constant 0 : index
    %c2 = arith.constant 2 : index
    %c0_40 = arith.constant 0 : index
    %c0_41 = arith.constant 0 : index
    %101 = vector.load %arg9[%c0_39, %c2, %c0_40, %c0_41] : memref<1x4x8x8xf32, #tpu.memory_space<vmem>>, vector<1x1x8x8xf32>
    %102 = vector.shape_cast %101 : vector<1x1x8x8xf32> to vector<8x8xf32>
    %103 = vector.shape_cast %100 : vector<8x8xf32> to vector<1x1x8x8xf32>
    tpu.vector_store %arg9[%c0_39, %c2, %c0_40, %c0_41], %103 {strides = array<i32>} : memref<1x4x8x8xf32, #tpu.memory_space<vmem>>, vector<1x1x8x8xf32>,
    %104 = arith.truncf %100 : vector<8x8xf32> to vector<8x8xbf16>
    %cst_42 = arith.constant dense<0.000000e+00> : vector<8x8xf32>
    %105 = tpu.matmul %104, %85, %cst_42 {dimension_numbers = #tpu.dot_dimension_numbers<[1], [0], [0], [1], [0, 0, 1, 1], [], []>} : vector<8x8xbf16>, vector<8x8xbf16>, vector<8x8xf32> -> vector<8x8xf32>
    %106 = vector.extract_strided_slice %9 {offsets = [0, 24], sizes = [8, 8], strides = [1, 1]} : vector<8x32xf32> to vector<8x8xf32>
    %107 = arith.truncf %106 : vector<8x8xf32> to vector<8x8xbf16>
    %108 = vector.extract_strided_slice %17 {offsets = [0, 24], sizes = [8, 8], strides = [1, 1]} : vector<8x32xf32> to vector<8x8xf32>
    %109 = arith.truncf %108 : vector<8x8xf32> to vector<8x8xbf16>
    %110 = vector.extract_strided_slice %25 {offsets = [0, 24], sizes = [8, 8], strides = [1, 1]} : vector<8x32xf32> to vector<8x8xf32>
    %111 = arith.truncf %110 : vector<8x8xf32> to vector<8x8xbf16>
    %cst_43 = arith.constant dense<0.000000e+00> : vector<8x8xf32>
    %112 = tpu.matmul %107, %109, %cst_43 {dimension_numbers = #tpu.dot_dimension_numbers<[1], [1], [0], [0], [0, 0, 1, 0], [], []>} : vector<8x8xbf16>, vector<8x8xbf16>, vector<8x8xf32> -> vector<8x8xf32>
    %cst_44 = arith.constant dense<0xFF800000> : vector<8xf32>
    %113 = vector.multi_reduction <maximumf>, %112, %cst_44 [1] : vector<8x8xf32> to vector<8xf32>
    %114 = vector.shape_cast %113 : vector<8xf32> to vector<8x1xf32>
    %115 = vector.broadcast %114 : vector<8x1xf32> to vector<8x8xf32>
    %116 = arith.subf %112, %115 : vector<8x8xf32>
    %117 = math.exp %116 : vector<8x8xf32>
    %cst_45 = arith.constant dense<0.000000e+00> : vector<8xf32>
    %118 = vector.multi_reduction <add>, %117, %cst_45 [1] : vector<8x8xf32> to vector<8xf32>
    %119 = vector.shape_cast %118 : vector<8xf32> to vector<8x1xf32>
    %120 = tpu.reciprocal %119 {approx = true} : vector<8x1xf32> -> vector<8x1xf32>
    %121 = arith.mulf %119, %120 : vector<8x1xf32>
    %cst_46 = arith.constant 2.000000e+00 : f32
    %122 = vector.broadcast %cst_46 : f32 to vector<8x1xf32>
    %123 = arith.subf %122, %121 : vector<8x1xf32>
    %124 = arith.mulf %120, %123 : vector<8x1xf32>
    %125 = vector.broadcast %124 : vector<8x1xf32> to vector<8x8xf32>
    %126 = arith.mulf %117, %125 : vector<8x8xf32>
    %c0_47 = arith.constant 0 : index
    %c3 = arith.constant 3 : index
    %c0_48 = arith.constant 0 : index
    %c0_49 = arith.constant 0 : index
    %127 = vector.load %arg9[%c0_47, %c3, %c0_48, %c0_49] : memref<1x4x8x8xf32, #tpu.memory_space<vmem>>, vector<1x1x8x8xf32>
    %128 = vector.shape_cast %127 : vector<1x1x8x8xf32> to vector<8x8xf32>
    %129 = vector.shape_cast %126 : vector<8x8xf32> to vector<1x1x8x8xf32>
    tpu.vector_store %arg9[%c0_47, %c3, %c0_48, %c0_49], %129 {strides = array<i32>} : memref<1x4x8x8xf32, #tpu.memory_space<vmem>>, vector<1x1x8x8xf32>,
    %130 = arith.truncf %126 : vector<8x8xf32> to vector<8x8xbf16>
    %cst_50 = arith.constant dense<0.000000e+00> : vector<8x8xf32>
    %131 = tpu.matmul %130, %111, %cst_50 {dimension_numbers = #tpu.dot_dimension_numbers<[1], [0], [0], [1], [0, 0, 1, 1], [], []>} : vector<8x8xbf16>, vector<8x8xbf16>, vector<8x8xf32> -> vector<8x8xf32>
    %132 = tpu.concatenate %53, %79, %105, %131 in 1 : vector<8x8xf32>, vector<8x8xf32>, vector<8x8xf32>, vector<8x8xf32> -> vector<8x32xf32>
    %133 = arith.truncf %132 : vector<8x32xf32> to vector<8x32xbf16>
    %cst_51 = arith.constant dense<0.000000e+00> : vector<8x32xf32>
    %134 = tpu.matmul %133, %26, %cst_51 {dimension_numbers = #tpu.dot_dimension_numbers<[1], [0], [0], [1], [0, 0, 1, 1], [], []>} : vector<8x32xbf16>, vector<32x32xbf16>, vector<8x32xf32> -> vector<8x32xf32>
    %135 = vector.broadcast %27 : vector<1x32xf32> to vector<8x32xf32>
    %136 = arith.addf %134, %135 : vector<8x32xf32>
    %c0_52 = arith.constant 0 : index
    %c0_53 = arith.constant 0 : index
    %c0_54 = arith.constant 0 : index
    %137 = vector.load %arg8[%c0_52, %c0_53, %c0_54] : memref<1x8x32xf32, #tpu.memory_space<vmem>>, vector<1x8x32xf32>
    %138 = vector.shape_cast %137 : vector<1x8x32xf32> to vector<8x32xf32>
    %139 = vector.shape_cast %136 : vector<8x32xf32> to vector<1x8x32xf32>
    tpu.vector_store %arg8[%c0_52, %c0_53, %c0_54], %139 {strides = array<i32>} : memref<1x8x32xf32, #tpu.memory_space<vmem>>, vector<1x8x32xf32>,
    return
  }
  func.func @transform_0(%arg0: i32) -> (i32, i32, i32) {
    %c0_i32 = arith.constant 0 : i32
    %c0_i32_0 = arith.constant 0 : i32
    %c0_i32_1 = arith.constant 0 : i32
    return %arg0, %c0_i32, %c0_i32_0 : i32, i32, i32
  }
  func.func @transform_1(%arg0: i32) -> (i32, i32, i32) {
    %c0_i32 = arith.constant 0 : i32
    %c0_i32_0 = arith.constant 0 : i32
    %c0_i32_1 = arith.constant 0 : i32
    return %arg0, %c0_i32, %c0_i32_0 : i32, i32, i32
  }
  func.func @transform_2(%arg0: i32) -> (i32, i32, i32) {
    %c0_i32 = arith.constant 0 : i32
    %c0_i32_0 = arith.constant 0 : i32
    %c0_i32_1 = arith.constant 0 : i32
    return %arg0, %c0_i32, %c0_i32_0 : i32, i32, i32
  }
  func.func @transform_3(%arg0: i32) -> (i32, i32) {
    %c0_i32 = arith.constant 0 : i32
    %c0_i32_0 = arith.constant 0 : i32
    %c0_i32_1 = arith.constant 0 : i32
    return %c0_i32, %c0_i32_0 : i32, i32
  }
  func.func @transform_4(%arg0: i32) -> (i32, i32) {
    %c0_i32 = arith.constant 0 : i32
    %c0_i32_0 = arith.constant 0 : i32
    %c0_i32_1 = arith.constant 0 : i32
    return %c0_i32, %c0_i32_0 : i32, i32
  }
  func.func @transform_5(%arg0: i32) -> (i32, i32) {
    %c0_i32 = arith.constant 0 : i32
    %c0_i32_0 = arith.constant 0 : i32
    %c0_i32_1 = arith.constant 0 : i32
    return %c0_i32, %c0_i32_0 : i32, i32
  }
  func.func @transform_6(%arg0: i32) -> (i32, i32) {
    %c0_i32 = arith.constant 0 : i32
    %c0_i32_0 = arith.constant 0 : i32
    %c0_i32_1 = arith.constant 0 : i32
    return %c0_i32, %c0_i32_0 : i32, i32
  }
  func.func @transform_7(%arg0: i32) -> (i32, i32, i32) {
    %c0_i32 = arith.constant 0 : i32
    %c0_i32_0 = arith.constant 0 : i32
    %c0_i32_1 = arith.constant 0 : i32
    return %arg0, %c0_i32, %c0_i32_0 : i32, i32, i32
  }
  func.func @transform_8(%arg0: i32) -> (i32, i32, i32, i32) {
    %c0_i32 = arith.constant 0 : i32
    %c0_i32_0 = arith.constant 0 : i32
    %c0_i32_1 = arith.constant 0 : i32
    %c0_i32_2 = arith.constant 0 : i32
    return %arg0, %c0_i32, %c0_i32_0, %c0_i32_1 : i32, i32, i32, i32
  }
}

</mosaic_0001>

<bundles_post_ra>
// kernel: tpu_custom_call.1
= control target key start
LH: loop header
LB: loop body
LE: loop exit
PB: predicated region body
PF: predicated region fallthrough
CT: control target
= control target key end

     0   :  { %s2310_s0 = inlined_call_operand.hbm [shape: f32[2,8,32], index: 0, kind: input, shape index: {}]   ;;  %s2311_s1 = inlined_call_operand.hbm [shape: f32[2,8,32], index: 1, kind: input, shape index: {}]   ;;  %s2312_s2 = inlined_call_operand.hbm [shape: f32[2,8,32], index: 2, kind: input, shape index: {}]   ;;  %s2313_s3 = inlined_call_operand.hbm [shape: bf16[32,96], index: 3, kind: input, shape index: {}]   ;;  %s2314_s4 = inlined_call_operand.vmem [shape: f32[1,96], index: 4, kind: input, shape index: {}]   ;;  %s2315_s5 = inlined_call_operand.vmem [shape: bf16[32,32], index: 5, kind: input, shape index: {}]   ;;  %s2316_s6 = inlined_call_operand.vmem [shape: f32[1,32], index: 6, kind: input, shape index: {}]   ;;  %s2317_s7 = inlined_call_operand.hbm [shape: f32[2,8,32], index: 7, kind: output, shape index: {0}]   ;;  %s2318_s8 = inlined_call_operand.hbm [shape: f32[2,4,8,8], index: 8, kind: output, shape index: {1}]  }
   0x1   :  { %2338 = sst [smem:[#allocation24_spill]] %s2311_s1 }
   0x2   :  { %2339 = sst [smem:[#allocation25_spill]] %s2316_s6 }
   0x3   :  { %2340 = sst [smem:[#allocation26_spill]] %s2317_s7 }
   0x4   :  { %2341 = sst [smem:[#allocation27_spill]] %s2318_s8 }
   0x5   :  { %14 = vsyncpa [#allocation3], 0 }
   0x6   :  { %16 = vsyncpa [#allocation3 + $0x1], 0 }
   0x7   :  { %17 = vsyncpa [#allocation6], 0 }
   0x8   :  { %19 = vsyncpa [#allocation6 + $0x1], 0 }
   0x9   :  { %20 = vsyncpa [#allocation9], 0 }
   0xa   :  { %21 = vsyncpa [#allocation4], 0 }
   0xb   :  { %23 = vsyncpa [#allocation4 + $0x1], 0 }
   0xc   :  { %24 = vsyncpa [#allocation12], 0 }
   0xd   :  { %26 = vsyncpa [#allocation12 + $0x1], 0  ;;  %s1881_s27 = smov 0   ;;  %s1883_s28 = smov 0  }
   0xe   :  { %s1885_s29 = smov 0   ;;  %s1887_s30 = smov 0  }
   0xf LB: > { %2342 = sst [smem:[#allocation18_spill]] %s1803_s27  ;;  %s1902_s9 = sadd.s32 1, %s1815_s30   ;;  %s1815_s30 = sphi %s1887_s30, %s2375_s30   ;;  %s1811_s29 = sphi %s1885_s29, %s2379_s29   ;;  %s1807_s28 = sphi %s1883_s28, %s2378_s28   ;;  %s1803_s27 = sphi %s1881_s27, %s2377_s27  }
  0x10   : > { %2343 = sst [smem:[#allocation19_spill]] %s1815_s30  ;;  %s39_s10 = sadd.s32 1, %s1811_s29 }
  0x11   : > { %2344 = sst [smem:[#allocation20_spill]] %s1902_s9  ;;  %s36_s11 = ssub.s32 %s1815_s30, %s1902_s9 }
  0x12   : > { %p2319_p0 = scmp.ne.s32.totalorder %s1811_s29, %s1807_s28  ;;  %p37_p1 = scmp.eq.s32.totalorder %s36_s11, 0 }
  0x13   : > { %p47_p2 = scmp.eq.s32.totalorder %s1815_s30, 0  ;;  %p1522_p4 = scmp.lt.s32.totalorder %s1815_s30, 2 }
  0x14   : > { %s1913_s12 = scalar_select %p37_p1, %s1811_s29, %s39_s10  }
  0x15   : > { %p48_p5 = por %p47_p2, %p2319_p0  ;;  %s2320_s13 = sand.u32 1, %s1811_s29  }
  0x16   : > { %2345 = sst [smem:[#allocation21_spill]] %s1913_s12  ;;  %s1921_s14 = sshll.u32 %s2320_s13, 3 }
  0x17   : > { %s1924_s15 = sshll.u32 %s1815_s30, 7  ;;  %p1926_p6 = pnand %p1522_p4, %p48_p5 }
  0x18   : > { %s304_s17 = sand.u32 1, %s1815_s30   ;;  %s2347_s1 = sld [smem:[#allocation24_spill]] }
  0x19   : > { %s2346_s16 = scalar_select %p1926_p6, 1, 0 }
  0x1a   : > { %s308_s21 = scalar_lea.vmem [#allocation5], %s1921_s14  ;;  %s1940_s23 = scalar_lea.sflag [#allocation6], %s304_s17 }
  0x1b   : > { %s315_s22 = sshll.u32 %s308_s21, 4  ;;  %p1946_p8 = pneg %p1926_p6  ;;  %s1938_s22 = int_to_ptr.vmem [resolvable:$true] %s315_s22 }
  0x1d   : > { %s2348_s25 = scalar_select %p1946_p8, 1, 0 }
  0x1e   : > { %s1935_s20 = scalar_lea.hbm %s2347_s1, %s1924_s15  ;;  %s1596_s11 = scalar_lea.hbm %s2347_s1, 256 }
  0x1f   : > { %s1591_s24 = scalar_lea.hbm %s1935_s20, 128  ;;  %p1597_p11 = scmp.lt.u32.totalorder %s1935_s20, %s2347_s1 }
  0x20   : > { %p1592_p7 = scmp.ne.s32.totalorder %s1935_s20, %s1591_s24  ;;  %p1598_p12 = scmp.lt.u32.totalorder %s1596_s11, %s1591_s24 }
  0x21   : > { %p1600_p1 = scmp.lt.u32.totalorder %s1591_s24, %s1935_s20 }
  0x22   : > { %p1594_p9 = pnand %p1946_p8, %p1592_p7  ;;  %p1599_p13 = por %p1598_p12, %p1597_p11 }
  0x24   : > { %p1595_p10 = pneg %p1594_p9  ;;  %p1601_p2 = por %p1600_p1, %p1599_p13 }
  0x26   : > { %p1602_p4 = pnand %p1601_p2, %p1595_p10 }
  0x28   : > { %1605 = shalt.err (!%p1602_p4)
}
  0x29   : > { %s1606_s17 = scalar_lea.vmem %s1938_s22, 128  ;;  %s1817_s21 = smov [#allocation5]  }
  0x2a   : > { %p1607_p5 = scmp.ne.s32.totalorder %s1938_s22, %s1606_s17  ;;  %s1611_s26 = sshll.u32 %s1817_s21, 4  ;;  %s1612_s26 = int_to_ptr.vmem [resolvable:$false] %s1611_s26 }
  0x2b   : > { %s1613_s10 = scalar_lea.vmem %s1612_s26, 256  ;;  %p1614_p3 = scmp.lt.s32.totalorder %s1938_s22, %s1612_s26 }
  0x2c   : > { %p1609_p7 = pnand %p1607_p5, %p1946_p8  ;;  %p1615_p0 = scmp.lt.s32.totalorder %s1613_s10, %s1606_s17 }
  0x2e   : > { %p1610_p9 = pneg %p1609_p7  ;;  %p1616_p11 = por %p1615_p0, %p1614_p3 }
  0x30   : > { %p1617_p12 = pnand %p1616_p11, %p1610_p9 }
  0x32   : > { %1620 = shalt.err (!%p1617_p12)
}
  0x33   : > { %1510 = dma.hbm_to_vmem [thread:$0]  (!%p1926_p6), %s1935_s20, 128, %s1938_s22, %s1940_s23  }
  0x34   : > { %s1971_s24 = sadd.s32 4294967295, %s1815_s30   ;;  %s1332_s11 = sadd.s32 4294967294, %s1815_s30  }
  0x35   : > { %p52_p0 = scmp.ne.s32.totalorder %s1807_s28, %s1803_s27  ;;  %p2327_p3 = scmp.eq.s32.totalorder %s1971_s24, 0 }
  0x36   : > { %p212_p10 = scmp.eq.s32.totalorder %s1971_s24, 1  ;;  %p218_p13 = scmp.eq.s32.totalorder %s1332_s11, 1 }
  0x37   : > { %p1980_p1 = por %p2327_p3, %p52_p0  ;;  %p1333_p2 = scmp.ge.s32.totalorder %s1815_s30, 1 }
  0x38   : > { %p2350_p4 = scmp.ne.s32.totalorder %s1811_s29, %s1807_s28  ;;  %p1992_p7 = por %p218_p13, %p52_p0 }
  0x39   : > { %s2349_s18 = scalar_select %p1980_p1, 1, 0 }
  0x3a   : > { %p1988_p5 = por %p212_p10, %p2350_p4  ;;  %p251_p9 = scmp.lt.s32.totalorder %s1815_s30, 3 }
  0x3b   : > { %s2353_s22 = scalar_select %p1992_p7, 1, 0 }
  0x3c   : > { %s2351_s20 = scalar_select %p1988_p5, 1, 0 }
  0x3d   : > { %2354 = sst [smem:[#allocation23_spill]] %s2353_s22  ;;  %p1997_p11 = pnand %p1333_p2, %p251_p9 }
  0x3e   : > { %2352 = sst [smem:[#allocation22_spill]] %s2351_s20  ;;  %s1818_s17 = smov [#allocation8]  }
  0x3f   : > { %s2355_s19 = scalar_select %p1997_p11, 1, 0 }
  0x40   : > { %s263_s21 = sshll.u32 %s1818_s17, 4  ;;  %p1500_p12 = pneg %p1997_p11  ;;  %s2001_s21 = int_to_ptr.vmem [resolvable:$true] %s263_s21 }
  0x41   : > { %s2009_s11 = scalar_lea.hbm %s2310_s0, %s1924_s15  ;;  %s290_s1 = scalar_lea.vmem [#allocation2], %s1921_s14 }
  0x42   : > { %p2013_p0 = pnand %p1500_p12, %p2327_p3  ;;  %s297_s12 = sshll.u32 %s290_s1, 4  ;;  %s2018_s12 = int_to_ptr.vmem [resolvable:$true] %s297_s12 }
  0x43   : > { %s2024_s30 = scalar_lea.hbm %s2312_s2, %s1924_s15  ;;  %s1621_s26 = scalar_lea.hbm %s2313_s3, 256 }
  0x44   : > { %p1622_p10 = scmp.ne.s32.totalorder %s2313_s3, %s1621_s26  ;;  %p1623_p13 = pneg %p2013_p0 }
  0x45   : > { %p1628_p9 = scmp.lt.u32.totalorder %s1621_s26, %s2313_s3 }
  0x46   : > { %p1624_p2 = pnand %p1623_p13, %p1622_p10 }
  0x48   : > { %p1625_p4 = pneg %p1624_p2 }
  0x4a   : > { %p1630_p12 = pnand %p1628_p9, %p1625_p4 }
  0x4c   : > { %1633 = shalt.err (!%p1630_p12)
}
  0x4d   : > { %s1634_s9 = scalar_lea.vmem %s2001_s21, 256  ;;  %p1642_p1 = scmp.lt.s32.totalorder %s2001_s21, %s2001_s21 }
  0x4e   : > { %p1635_p3 = scmp.ne.s32.totalorder %s2001_s21, %s1634_s9  ;;  %p1643_p11 = scmp.lt.s32.totalorder %s1634_s9, %s1634_s9 }
  0x50   : > { %p1637_p7 = pnand %p1635_p3, %p1623_p13  ;;  %p1644_p6 = por %p1643_p11, %p1642_p1 }
  0x52   : > { %p1638_p5 = pneg %p1637_p7 }
  0x54   : > { %p1645_p8 = pnand %p1644_p6, %p1638_p5 }
  0x56   : > { %1648 = shalt.err (!%p1645_p8)
}
  0x57   : > { %s1819_s7 = smov 64   ;;  %s1820_s6 = smov 4  }
  0x58   : > { %1503 = dma.hbm_to_vmem [thread:$0]  (!%p2013_p0), %s2313_s3, 256, %s2001_s21, [#allocation9], %s1819_s7, %s1819_s7, %s1820_s6  }
  0x59   : > { %s2357_s22 = sand.u32 1, %s1811_s29   ;;  %s1649_s26 = scalar_lea.hbm %s2009_s11, 128 }
  0x5a   : > { %s287_s17 = scalar_lea.sflag [#allocation3], %s2357_s22  ;;  %p1650_p6 = scmp.ne.s32.totalorder %s2009_s11, %s1649_s26 }
  0x5b   : > { %p2358_p8 = scmp.ne.s32.totalorder %s2348_s25, 0  ;;  %s1654_s9 = scalar_lea.hbm %s2310_s0, 256 }
  0x5c   : > { %p1655_p5 = scmp.lt.u32.totalorder %s2009_s11, %s2310_s0  ;;  %p1656_p7 = scmp.lt.u32.totalorder %s1654_s9, %s1649_s26 }
  0x5d   : > { %p1652_p3 = pnand %p1650_p6, %p2358_p8  ;;  %p1658_p10 = scmp.lt.u32.totalorder %s1649_s26, %s2009_s11 }
  0x5e   : > { %p1657_p11 = por %p1656_p7, %p1655_p5 }
  0x5f   : > { %p1653_p1 = pneg %p1652_p3 }
  0x60   : > { %p1659_p13 = por %p1658_p10, %p1657_p11 }
  0x62   : > { %p1660_p0 = pnand %p1659_p13, %p1653_p1 }
  0x64   : > { %1663 = shalt.err (!%p1660_p0)
}
  0x65   : > { %s1664_s13 = scalar_lea.vmem %s2018_s12, 128  ;;  %s1821_s21 = smov [#allocation2]  }
  0x66   : > { %p1665_p2 = scmp.ne.s32.totalorder %s2018_s12, %s1664_s13  ;;  %s1669_s7 = sshll.u32 %s1821_s21, 4  ;;  %s1670_s7 = int_to_ptr.vmem [resolvable:$false] %s1669_s7 }
  0x67   : > { %s1671_s8 = scalar_lea.vmem %s1670_s7, 256  ;;  %p1672_p12 = scmp.lt.s32.totalorder %s2018_s12, %s1670_s7 }
  0x68   : > { %p1667_p4 = pnand %p1665_p2, %p2358_p8  ;;  %p1673_p6 = scmp.lt.s32.totalorder %s1671_s8, %s1664_s13 }
  0x6a   : > { %p1668_p9 = pneg %p1667_p4  ;;  %p1674_p3 = por %p1673_p6, %p1672_p12 }
  0x6c   : > { %p1675_p5 = pnand %p1674_p3, %p1668_p9 }
  0x6e   : > { %1678 = shalt.err (!%p1675_p5)
}
  0x6f   : > { %p2359_p1 = scmp.ne.s32.totalorder %s2346_s16, 0  ;;  %s326_s20 = scalar_lea.vmem [#allocation7], %s1921_s14 }
  0x70   : > { %s333_s6 = sshll.u32 %s326_s20, 4  ;;  %s1679_s27 = scalar_lea.hbm %s2024_s30, 128  ;;  %s334_s6 = int_to_ptr.vmem [resolvable:$true] %s333_s6 }
  0x71   : > { %1507 = dma.hbm_to_vmem [thread:$0]  (!%p2359_p1), %s2009_s11, 128, %s2018_s12, %s287_s17  }
  0x72   : > { %p1680_p7 = scmp.ne.s32.totalorder %s2024_s30, %s1679_s27  ;;  %s1684_s26 = scalar_lea.hbm %s2312_s2, 256 }
  0x73   : > { %p1685_p13 = scmp.lt.u32.totalorder %s2024_s30, %s2312_s2  ;;  %p1686_p0 = scmp.lt.u32.totalorder %s1684_s26, %s1679_s27 }
  0x74   : > { %p1682_p11 = pnand %p1680_p7, %p2358_p8  ;;  %p1688_p4 = scmp.lt.u32.totalorder %s1679_s27, %s2024_s30 }
  0x75   : > { %p1687_p2 = por %p1686_p0, %p1685_p13 }
  0x76   : > { %p1683_p10 = pneg %p1682_p11 }
  0x77   : > { %p1689_p9 = por %p1688_p4, %p1687_p2 }
  0x79   : > { %p1690_p12 = pnand %p1689_p9, %p1683_p10 }
  0x7b   : > { %1693 = shalt.err (!%p1690_p12)
}
  0x7c   : > { %s1694_s12 = scalar_lea.vmem %s334_s6, 128  ;;  %s1822_s14 = smov [#allocation7]  }
  0x7d   : > { %p1695_p6 = scmp.ne.s32.totalorder %s334_s6, %s1694_s12  ;;  %s1699_s11 = sshll.u32 %s1822_s14, 4  ;;  %s1700_s11 = int_to_ptr.vmem [resolvable:$false] %s1699_s11 }
  0x7e   : > { %s1701_s17 = scalar_lea.vmem %s1700_s11, 256  ;;  %p1702_p7 = scmp.lt.s32.totalorder %s334_s6, %s1700_s11 }
  0x7f   : > { %p1697_p3 = pnand %p1695_p6, %p2358_p8  ;;  %p1703_p11 = scmp.lt.s32.totalorder %s1701_s17, %s1694_s12 }
  0x81   : > { %p1698_p5 = pneg %p1697_p3  ;;  %p1704_p1 = por %p1703_p11, %p1702_p7 }
  0x83   : > { %p1705_p0 = pnand %p1704_p1, %p1698_p5 }
  0x85   : > { %1708 = shalt.err (!%p1705_p0)
}
  0x86   : > { %p2360_p13 = scmp.ne.s32.totalorder %s2346_s16, 0  ;;  %p2361_p10 = scmp.ne.s32.totalorder %s2355_s19, 0 }
  0x87   : > { %s2092_s25 = sand.u32 (!%p2361_p10), 1, %s1807_s28   ;;  %p2362_p8 = scmp.ne.s32.totalorder (!%p2361_p10), %s2349_s18, 0 }
  0x88   : > { %1513 = dma.hbm_to_vmem [thread:$0]  (!%p2360_p13), %s2024_s30, 128, %s334_s6, %s1940_s23  }
  0x89   : > { %342 = sbr.rel (%p2361_p10) target bundleno = 1726 (0x6be), region = 48  ;;  %s2095_s9 = sshll.u32 (!%p2361_p10), %s2092_s25, 3 }
  0x8a   : > { %s345_s13 = scalar_lea.sflag (!%p2361_p10), [#allocation3], %s2092_s25  ;;  %s348_s21 = scalar_lea.vmem (!%p2361_p10), [#allocation2], %s2095_s9 }
  0x90   : > { %1782 = dma.done.wait (%p2362_p8), %s345_s13, 128  }
  0x91   : > { %1784 = vsyncadd (%p2362_p8), %s345_s13, 4294967168  ;;  %s353_s30 = sand.u32 1, %s1971_s24   ;;  %s357_s23 = scalar_lea.vmem [#allocation5], %s2095_s9 }
  0x92   : > { %s354_s16 = scalar_lea.sflag [#allocation6], %s353_s30 }
  0x93   : > { %1786 = dma.done.wait (%p2362_p8), %s354_s16, 256  }
  0x94   : > { %1788 = vsyncadd (%p2362_p8), %s354_s16, 4294967040  ;;  %s366_s19 = scalar_lea.vmem [#allocation7], %s2095_s9  ;;  %p2363_p1 = scmp.eq.s32.totalorder %s1971_s24, 0 }
  0x96   : > { %1790 = dma.done.wait (%p2363_p1), [#allocation9], 256   ;;  %p2364_p2 = pmov %p2363_p1 }
  0x97   : > { %v1823_v0 = vmov 0.0   ;;  %vm1824_vm0 = vmmov 0   ;;  %v1571_v1 = vld [vmem:[#allocation8] sm:$0xff]   ;;  %s1825_s18 = smov 96   ;;  %v1572_v2 = vld [vmem:[#allocation8 + $0x8] sm:$0xff]   ;;  %v424_v3 = vld [vmem:[%s348_s21] sm:$0xff] }
  0x98   : > { %1792 = vsyncadd (%p2364_p2), [#allocation9], 4294967040  ;;  %1406 = vmatprep.subr.bf16.mxu0 %v1823_v0  ;;  %1414 = vmatprep.subr.bf16.mxu1 %v1823_v0  ;;  %v2123_v4 = vld [vmem:[%s2314_s4] ss:$0 sm:$0xff]  ;;  %v425_v5 = vpack.c.bf16 %v424_v3, %v424_v3  ;;  %vm444_vm1 = vcmask 261120   ;;  %v488_v7 = vld [vmem:[%s357_s23] sm:$0xff] }
  0x99   : > { %1410 = vmatprep.mubr.msk.bf16.mxu0 %vm1824_vm0, %v1823_v0  ;;  %1418 = vmatprep.mubr.msk.bf16.mxu1 %vm1824_vm0, %v1823_v0  ;;  %v489_v9 = vpack.c.bf16 %v488_v7, %v488_v7  ;;  %s1826_s20 = smov 120   ;;  %s1827_s6 = smov 112   ;;  %vm604_vm2 = vcmask 64512   ;;  %v542_v33 = vld [vmem:[%s366_s19] sm:$0xff]  ;;  %vm670_vm3 = vcmask 1043456   ;;  %vm1075_vm4 = vcmask 130048  }
  0x9a   : > { %490 = vrot.lane.b32.xlu0 %v1571_v1, %s1825_s18  ;;  %1407 = vmatpush3.bf16.msra.mxu0 %v1571_v1  ;;  %s1828_s27 = smov 104   ;;  %s1829_s15 = smov 64   ;;  %v543_v35 = vpack.c.bf16 %v542_v33, %v542_v33  ;;  %vm1077_vm5 = vcmask 195584  }
  0x9b   : > { %1408 = vmatprep.subr.bf16.mxu0 %v1823_v0  ;;  %496 = vrot.lane.b32.xlu1 %v2123_v4, %s1825_s18  ;;  %s1348_s22 = sshll.u32 %s2092_s25, 5  ;;  %s1830_s12 = smov 8  }
  0x9c   : > { %s2188_s26 = scalar_lea.vmem [#allocation11], %s1348_s22  ;;  %s1831_s17 = smov 16  }
  0x9d   : > { %s1832_s13 = smov 24   ;;  %s2365_s21 = sld [smem:[#allocation22_spill]] }
  0x9e   : > { %492 = vrot.lane.b32.xlu0 %v1572_v2, %s1825_s18  ;;  %1409 = vmatpush3.bf16.msra.mxu0 %v1572_v2  ;;  %s1377_s30 = sshll.u32 %s1971_s24, 9  ;;  %s1174_s16 = sshll.u32 %s2188_s26, 4  ;;  %s2230_s16 = int_to_ptr.vmem [resolvable:$true] %s1174_s16 }
  0x9f   : > { %1422 = vmatprep.subr.bf16.mxu0 %v1823_v0  ;;  %s2366_s18 = sld [smem:[#allocation27_spill]]  ;;  %s1148_s8 = scalar_lea.sflag [#allocation12], %s2092_s25 }
  0xa1   : > { %1411 = vmatmul.mubr.msk.bf16.vlgmr.msra.gmra.mrb[0].mxu0 %vm444_vm1, %v425_v5 }
  0xa2   : > { %1426 = vmatprep.mubr.msk.bf16.mxu0 %vm1824_vm0, %v1823_v0 }
  0xa3   : > { %p2367_p9 = scmp.ne.s32.totalorder %s2365_s21, 0 }
  0xa5   : > { %s2228_s7 = scalar_lea.hbm %s2366_s18, %s1377_s30 }
 0x10c   : > { %v491_v6 = vpop.permute.xlu0 %490 }
 0x10d   : > { %1415 = vmatpush3.bf16.msra.mxu1 %v491_v6  ;;  %v497_v16 = vpop.permute.xlu1 %496 }
 0x10e   : > { %1416 = vmatprep.subr.bf16.mxu1 %v1823_v0 }
 0x110   : > { %v493_v8 = vpop.permute.xlu0 %492 }
 0x111   : > { %1417 = vmatpush3.bf16.msra.mxu1 %v493_v8 }
 0x112   : > { %1430 = vmatprep.subr.bf16.mxu1 %v1823_v0 }
 0x114   : > { %1419 = vmatmul.mubr.msk.bf16.vlgmr.msra.gmra.mrb[0].mxu1 %vm444_vm1, %v489_v9 }
 0x115   : > { %1432 = vmatprep.mubr.msk.bf16.mxu1 %vm1824_vm0, %v1823_v0 }
 0x174   : > { %v482_v10 = vpop.f32.mrb[0].mxu0 }
 0x175   : > { %v483_v11 = vadd.f32 %v2123_v4, %v482_v10  ;;  %v1412_v12 = vpop.f32.mrb[1].mxu0 }
 0x176   : > { %v485_v13 = vpop.f32.mrb[2].mxu0 }
 0x177   : > { %v601_v14 = vpack.c.bf16 %v483_v11, %v483_v11  ;;  %v1413_v15 = vpop.f32.mrb[3].mxu0 }
 0x179   : > { %715 = vrot.lane.b32.xlu0 %v601_v14, %s1826_s20 }
 0x17d   : > { %832 = vrot.lane.b32.xlu0 %v601_v14, %s1827_s6 }
 0x181   : > { %947 = vrot.lane.b32.xlu0 %v601_v14, %s1828_s27 }
 0x185   : > { %546 = vrot.lane.b32.xlu0 %v1572_v2, %s1829_s15 }
 0x1e7   : > { %v536_v17 = vpop.f32.mrb[0].mxu1 }
 0x1e8   : > { %v537_v18 = vadd.f32 %v536_v17, %v497_v16  ;;  %v1420_v19 = vpop.f32.mrb[1].mxu1 }
 0x1e9   : > { %v539_v20 = vpop.f32.mrb[2].mxu1 }
 0x1ea   : > { %v602_v21 = vpack.c.bf16 %v537_v18, %v537_v18  ;;  %v1421_v22 = vpop.f32.mrb[3].mxu1 }
 0x1eb   : > { %v716_v24 = vpop.permute.xlu0 %715 }
 0x1ec   : > { %718 = vrot.lane.b32.xlu1 %v602_v21, %s1826_s20  ;;  %v609_v23 = vsel %vm604_vm2, %v602_v21, 0 }
 0x1ed   : > { %1431 = vmatpush3.bf16.xpose.msra.mxu1 %v609_v23 }
 0x1ee   : > { %1442 = vmatprep.subr.bf16.mxu1 %v1823_v0 }
 0x1ef   : > { %v833_v28 = vpop.permute.xlu0 %832 }
 0x1f0   : > { %834 = vrot.lane.b32.xlu1 %v602_v21, %s1827_s6 }
 0x1f3   : > { %v948_v31 = vpop.permute.xlu0 %947 }
 0x1f4   : > { %949 = vrot.lane.b32.xlu1 %v602_v21, %s1828_s27  ;;  %1433 = vmatmul.mubr.msk.bf16.vlgmr.msra.gmra.mrb[4].mxu1 %vm604_vm2, %v601_v14 }
 0x1f5   : > { %1444 = vmatprep.mubr.msk.bf16.mxu1 %vm1824_vm0, %v1823_v0 }
 0x1f7   : > { %v547_v34 = vpop.permute.xlu0 %546 }
 0x1f8   : > { %544 = vrot.lane.b32.xlu1 %v1571_v1, %s1829_s15 }
 0x25e   : > { %v719_v25 = vpop.permute.xlu1 %718 }
 0x25f   : > { %v724_v26 = vsel %vm604_vm2, %v719_v25, 0 }
 0x260   : > { %1443 = vmatpush3.bf16.xpose.msra.mxu1 %v724_v26 }
 0x261   : > { %1454 = vmatprep.subr.bf16.mxu1 %v1823_v0 }
 0x262   : > { %v835_v27 = vpop.permute.xlu1 %834 }
 0x263   : > { %v840_v30 = vsel %vm604_vm2, %v835_v27, 0 }
 0x266   : > { %v950_v29 = vpop.permute.xlu1 %949 }
 0x267   : > { %1445 = vmatmul.mubr.msk.bf16.vlgmr.msra.gmra.mrb[8].mxu1 %vm604_vm2, %v716_v24  ;;  %v955_v36 = vsel %vm604_vm2, %v950_v29, 0 }
 0x268   : > { %1455 = vmatpush3.bf16.xpose.msra.mxu1 %v840_v30  ;;  %1456 = vmatprep.mubr.msk.bf16.mxu1 %vm1824_vm0, %v1823_v0 }
 0x269   : > { %1466 = vmatprep.subr.bf16.mxu1 %v1823_v0 }
 0x26a   : > { %v545_v32 = vpop.permute.xlu1 %544 }
 0x26b   : > { %1423 = vmatpush3.bf16.msra.mxu0 %v545_v32 }
 0x26c   : > { %1424 = vmatprep.subr.bf16.mxu0 %v1823_v0 }
 0x26f   : > { %1457 = vmatmul.mubr.msk.bf16.vlgmr.msra.gmra.mrb[12].mxu1 %vm604_vm2, %v833_v28  ;;  %1425 = vmatpush3.bf16.msra.mxu0 %v547_v34 }
 0x270   : > { %1467 = vmatpush3.bf16.xpose.msra.mxu1 %v955_v36  ;;  %1468 = vmatprep.mubr.msk.bf16.mxu1 %vm1824_vm0, %v1823_v0 }
 0x271   : > { %1436 = vmatprep.subr.bf16.mxu0 %v1823_v0  ;;  %1478 = vmatprep.subr.bf16.mxu1 %v1823_v0 }
 0x272   : > { %1427 = vmatmul.mubr.msk.bf16.vlgmr.msra.gmra.mrb[4].mxu0 %vm444_vm1, %v543_v35 }
 0x273   : > { %1438 = vmatprep.mubr.msk.bf16.mxu0 %vm1824_vm0, %v1823_v0 }
 0x277   : > { %1469 = vmatmul.mubr.msk.bf16.vlgmr.msra.gmra.mrb[16].mxu1 %vm604_vm2, %v948_v31 }
 0x278   : > { %1482 = vmatprep.mubr.msk.bf16.mxu1 %vm1824_vm0, %v1823_v0 }
 0x2c7   : > { %v645_v37 = vpop.f32.mrb[4].mxu1 }
 0x2c8   : > { %v1434_v38 = vpop.f32.mrb[5].mxu1  ;;  %v651_v39 = vsel %vm604_vm2, %v645_v37, -inf }
 0x2c9   : > { %652 = vmax.xlane.f32.xlu1 %v651_v39  ;;  %v648_v40 = vpop.f32.mrb[6].mxu1 }
 0x2ca   : > { %v1435_v41 = vpop.f32.mrb[7].mxu1 }
 0x33a   : > { %v760_v42 = vpop.f32.mrb[8].mxu1 }
 0x33b   : > { %v1446_v43 = vpop.f32.mrb[9].mxu1  ;;  %v766_v44 = vsel %vm604_vm2, %v760_v42, -inf }
 0x33c   : > { %767 = vmax.xlane.f32.xlu0 %v766_v44  ;;  %v763_v45 = vpop.f32.mrb[10].mxu1 }
 0x33d   : > { %v1447_v46 = vpop.f32.mrb[11].mxu1 }
 0x342   : > { %v876_v47 = vpop.f32.mrb[12].mxu1 }
 0x343   : > { %v1458_v48 = vpop.f32.mrb[13].mxu1  ;;  %v882_v49 = vsel %vm604_vm2, %v876_v47, -inf }
 0x344   : > { %883 = vmax.xlane.f32.xlu0 %v882_v49  ;;  %v879_v50 = vpop.f32.mrb[14].mxu1 }
 0x345   : > { %v1459_v51 = vpop.f32.mrb[15].mxu1  ;;  %v590_v62 = vpop.f32.mrb[4].mxu0 }
 0x346   : > { %v1428_v63 = vpop.f32.mrb[5].mxu0 }
 0x347   : > { %v593_v1 = vpop.f32.mrb[6].mxu0 }
 0x348   : > { %v1429_v2 = vpop.f32.mrb[7].mxu0 }
 0x349   : > { %v1574_v2 = vld [vmem:[%s2315_s5 + $0x8] sm:$0xff]  }
 0x34a   : > { %v991_v52 = vpop.f32.mrb[16].mxu1 }
 0x34b   : > { %v1470_v53 = vpop.f32.mrb[17].mxu1  ;;  %v997_v54 = vsel %vm604_vm2, %v991_v52, -inf }
 0x34c   : > { %998 = vmax.xlane.f32.xlu1 %v997_v54  ;;  %v994_v55 = vpop.f32.mrb[18].mxu1 }
 0x34d   : > { %v1471_v56 = vpop.f32.mrb[19].mxu1 }
 0x356   : > { %v653_v57 = vpop.xlane.xlu1 %652 }
 0x357   : > { %v654_v58 = vsub.f32 %v645_v37, %v653_v57 }
 0x359   : > { %v655_v59 = vmul.f32 1.442695, %v654_v58 }
 0x35a   : > { %550 = vrot.lane.b32.xlu0 %v2123_v4, %s1829_s15 }
 0x35b   : > { %1575 = vpow2.f32 %v655_v59 }
 0x365   : > { %v1576_v60 = vpop.eup %1575 }
 0x366   : > { %v657_v61 = vsel %vm604_vm2, %v1576_v60, 0.0 }
 0x367   : > { %658 = vadd.xlane.f32.xlu1 %v657_v61 }
 0x3c9   : > { %v768_v3 = vpop.xlane.xlu0 %767 }
 0x3ca   : > { %v769_v5 = vsub.f32 %v760_v42, %v768_v3 }
 0x3cc   : > { %v770_v6 = vmul.f32 1.442695, %v769_v5 }
 0x3ce   : > { %1577 = vpow2.f32 %v770_v6 }
 0x3d1   : > { %v884_v7 = vpop.xlane.xlu0 %883 }
 0x3d2   : > { %v885_v8 = vsub.f32 %v876_v47, %v884_v7 }
 0x3d4   : > { %v886_v9 = vmul.f32 1.442695, %v885_v8 }
 0x3d5   : > { %v551_v10 = vpop.permute.xlu0 %550 }
 0x3d6   : > { %1579 = vpow2.f32 %v886_v9  ;;  %v591_v11 = vadd.f32 %v590_v62, %v551_v10 }
 0x3d8   : > { %v1578_v4 = vpop.eup %1577  ;;  %v603_v12 = vpack.c.bf16 %v591_v11, %v591_v11 }
 0x3d9   : > { %v999_v13 = vpop.xlane.xlu1 %998  ;;  %v772_v14 = vsel %vm604_vm2, %v1578_v4, 0.0 }
 0x3da   : > { %v1000_v15 = vsub.f32 %v991_v52, %v999_v13  ;;  %773 = vadd.xlane.f32.xlu1 %v772_v14  ;;  %899 = vrot.lane.b32.xlu0 %v603_v12, %s1827_s6  ;;  %v672_v16 = vsel %vm670_vm3, %v603_v12, 0  ;;  %s1833_s6 = smov [#allocation11]  }
 0x3db   : > { %1437 = vmatpush3.bf16.msra.mxu0 %v672_v16 }
 0x3dc   : > { %v1001_v17 = vmul.f32 1.442695, %v1000_v15  ;;  %1448 = vmatprep.subr.bf16.mxu0 %v1823_v0 }
 0x3de   : > { %1581 = vpow2.f32 %v1001_v17  ;;  %1014 = vrot.lane.b32.xlu0 %v603_v12, %s1828_s27  ;;  %s1713_s27 = sshll.u32 %s1833_s6, 4  ;;  %s1714_s27 = int_to_ptr.vmem [resolvable:$false] %s1713_s27 }
 0x3df   : > { %s1715_s15 = scalar_lea.vmem %s1714_s27, 1024  ;;  %p1716_p3 = scmp.lt.s32.totalorder %s2230_s16, %s1714_s27 }
 0x3e0   : > { %v1580_v18 = vpop.eup %1579 }
 0x3e1   : > { %v888_v19 = vsel %vm604_vm2, %v1580_v18, 0.0 }
 0x3e2   : > { %889 = vadd.xlane.f32.xlu1 %v888_v19 }
 0x3e8   : > { %v1582_v20 = vpop.eup %1581 }
 0x3e9   : > { %v1003_v21 = vsel %vm604_vm2, %v1582_v20, 0.0 }
 0x3ea   : > { %1004 = vadd.xlane.f32.xlu1 %v1003_v21 }
 0x3f4   : > { %v659_v22 = vpop.xlane.xlu1 %658 }
 0x3f5   : > { %1583 = vrcp.f32 %v659_v22 }
 0x3fb   : > { %784 = vrot.lane.b32.xlu1 %v603_v12, %s1826_s20  ;;  %s1709_s20 = scalar_lea.vmem %s2230_s16, 512 }
 0x3fc   : > { %p1710_p4 = scmp.ne.s32.totalorder %s2230_s16, %s1709_s20  ;;  %p1717_p5 = scmp.lt.s32.totalorder %s1715_s15, %s1709_s20 }
 0x3fe   : > { %p1711_p12 = pnand %p1710_p4, %p2367_p9  ;;  %p1718_p7 = por %p1717_p5, %p1716_p3 }
 0x3ff   : > { %v1584_v23 = vpop.eup %1583 }
 0x400   : > { %v661_v24 = vmul.f32 %v1584_v23, %v659_v22  ;;  %p1712_p6 = pneg %p1711_p12 }
 0x402   : > { %v662_v25 = vsub.f32 2.0, %v661_v24  ;;  %p1719_p11 = pnand %p1718_p7, %p1712_p6 }
 0x404   : > { %v663_v26 = vmul.f32 %v1584_v23, %v662_v25 }
 0x406   : > { %v664_v27 = vmul.f32 %v1576_v60, %v663_v26  ;;  %v1573_v60 = vld [vmem:[%s2315_s5] sm:$0xff]  }
 0x407   : > { %1479 = vmatpush3.bf16.msra.mxu1 %v1573_v60 }
 0x408   : > { %665 = vst.msk [vmem:[%s2188_s26] sm:$0xff] %vm604_vm2, %v664_v27  ;;  %v666_v28 = vpack.c.bf16 %v664_v27, %v664_v27  ;;  %1480 = vmatprep.subr.bf16.mxu1 %v1823_v0 }
 0x40a   : > { %1439 = vmatmul.mubr.msk.bf16.vlgmr.msra.gmra.mrb[8].mxu0 %vm604_vm2, %v666_v28 }
 0x40b   : > { %1450 = vmatprep.mubr.msk.bf16.mxu0 %vm1824_vm0, %v1823_v0  ;;  %1481 = vmatpush3.bf16.msra.mxu1 %v1574_v2 }
 0x44c   : > { %v900_v44 = vpop.permute.xlu0 %899 }
 0x44d   : > { %v905_v45 = vsel %vm670_vm3, %v900_v44, 0 }
 0x450   : > { %v1015_v50 = vpop.permute.xlu0 %1014 }
 0x451   : > { %v1020_v53 = vsel %vm670_vm3, %v1015_v50, 0 }
 0x467   : > { %v774_v29 = vpop.xlane.xlu1 %773 }
 0x468   : > { %1585 = vrcp.f32 %v774_v29 }
 0x46f   : > { %v890_v30 = vpop.xlane.xlu1 %889 }
 0x470   : > { %1587 = vrcp.f32 %v890_v30 }
 0x472   : > { %v1586_v31 = vpop.eup %1585 }
 0x473   : > { %v776_v32 = vmul.f32 %v1586_v31, %v774_v29 }
 0x475   : > { %v777_v33 = vsub.f32 2.0, %v776_v32 }
 0x477   : > { %v778_v34 = vmul.f32 %v1586_v31, %v777_v33  ;;  %v1005_v35 = vpop.xlane.xlu1 %1004 }
 0x478   : > { %1589 = vrcp.f32 %v1005_v35 }
 0x479   : > { %v779_v36 = vmul.f32 %v1578_v4, %v778_v34 }
 0x47a   : > { %v1588_v37 = vpop.eup %1587 }
 0x47b   : > { %1358 = vst.msk [vmem:[%s2188_s26 + $0x8] sm:$0xff] %vm604_vm2, %v779_v36  ;;  %v892_v38 = vmul.f32 %v1588_v37, %v890_v30  ;;  %v785_v39 = vpop.permute.xlu1 %784  ;;  %v782_v42 = vpack.c.bf16 %v779_v36, %v779_v36 }
 0x47c   : > { %v790_v40 = vsel %vm670_vm3, %v785_v39, 0 }
 0x47d   : > { %v893_v41 = vsub.f32 2.0, %v892_v38  ;;  %1449 = vmatpush3.bf16.msra.mxu0 %v790_v40 }
 0x47e   : > { %1460 = vmatprep.subr.bf16.mxu0 %v1823_v0 }
 0x47f   : > { %v894_v43 = vmul.f32 %v1588_v37, %v893_v41 }
 0x480   : > { %1451 = vmatmul.mubr.msk.bf16.vlgmr.msra.gmra.mrb[12].mxu0 %vm604_vm2, %v782_v42 }
 0x481   : > { %v895_v46 = vmul.f32 %v1580_v18, %v894_v43  ;;  %1461 = vmatpush3.bf16.msra.mxu0 %v905_v45  ;;  %1462 = vmatprep.mubr.msk.bf16.mxu0 %vm1824_vm0, %v1823_v0 }
 0x482   : > { %v1590_v47 = vpop.eup %1589  ;;  %1472 = vmatprep.subr.bf16.mxu0 %v1823_v0 }
 0x483   : > { %1361 = vst.msk [vmem:[%s2188_s26 + $0x10] sm:$0xff] %vm604_vm2, %v895_v46  ;;  %v1007_v48 = vmul.f32 %v1590_v47, %v1005_v35  ;;  %v898_v51 = vpack.c.bf16 %v895_v46, %v895_v46 }
 0x485   : > { %v1008_v49 = vsub.f32 2.0, %v1007_v48 }
 0x487   : > { %v1009_v52 = vmul.f32 %v1590_v47, %v1008_v49 }
 0x488   : > { %1463 = vmatmul.mubr.msk.bf16.vlgmr.msra.gmra.mrb[16].mxu0 %vm604_vm2, %v898_v51 }
 0x489   : > { %v1010_v54 = vmul.f32 %v1582_v20, %v1009_v52  ;;  %1473 = vmatpush3.bf16.msra.mxu0 %v1020_v53  ;;  %1474 = vmatprep.mubr.msk.bf16.mxu0 %vm1824_vm0, %v1823_v0 }
 0x48b   : > { %1364 = vst.msk [vmem:[%s2188_s26 + $0x18] sm:$0xff] %vm604_vm2, %v1010_v54  ;;  %v1013_v55 = vpack.c.bf16 %v1010_v54, %v1010_v54 }
 0x490   : > { %1475 = vmatmul.mubr.msk.bf16.vlgmr.msra.gmra.mrb[20].mxu0 %vm604_vm2, %v1013_v55 }
 0x4dd   : > { %v708_v56 = vpop.f32.mrb[8].mxu0 }
 0x4de   : > { %v1440_v57 = vpop.f32.mrb[9].mxu0 }
 0x4df   : > { %v711_v58 = vpop.f32.mrb[10].mxu0 }
 0x4e0   : > { %v1441_v59 = vpop.f32.mrb[11].mxu0 }
 0x553   : > { %v826_v61 = vpop.f32.mrb[12].mxu0 }
 0x554   : > { %1063 = vrot.lane.b32.xlu0 %v826_v61, %s1830_s12  ;;  %v1452_v62 = vpop.f32.mrb[13].mxu0 }
 0x555   : > { %v829_v63 = vpop.f32.mrb[14].mxu0 }
 0x556   : > { %v1453_v1 = vpop.f32.mrb[15].mxu0 }
 0x55b   : > { %v941_v3 = vpop.f32.mrb[16].mxu0 }
 0x55c   : > { %1067 = vrot.lane.b32.xlu0 %v941_v3, %s1831_s17  ;;  %v1464_v5 = vpop.f32.mrb[17].mxu0 }
 0x55d   : > { %v944_v6 = vpop.f32.mrb[18].mxu0 }
 0x55e   : > { %v1465_v7 = vpop.f32.mrb[19].mxu0 }
 0x563   : > { %v1056_v8 = vpop.f32.mrb[20].mxu0 }
 0x564   : > { %1071 = vrot.lane.b32.xlu1 %v1056_v8, %s1832_s13  ;;  %v1476_v0 = vpop.f32.mrb[21].mxu0 }
 0x565   : > { %v1059_v9 = vpop.f32.mrb[22].mxu0 }
 0x566   : > { %v1477_v10 = vpop.f32.mrb[23].mxu0 }
 0x5c6   : > { %v1064_v11 = vpop.permute.xlu0 %1063 }
 0x5c7   : > { %v1074_v12 = vsel %vm604_vm2, %v708_v56, %v1064_v11 }
 0x5ce   : > { %v1068_v4 = vpop.permute.xlu0 %1067 }
 0x5cf   : > { %v1076_v13 = vsel %vm1075_vm4, %v1074_v12, %v1068_v4 }
 0x5d6   : > { %v1072_v14 = vpop.permute.xlu1 %1071 }
 0x5d7   : > { %v1078_v15 = vsel %vm1077_vm5, %v1076_v13, %v1072_v14 }
 0x5d8   : > { %v1079_v16 = vpack.c.bf16 %v1078_v15, %v1078_v15 }
 0x5da   : > { %1483 = vmatmul.mubr.msk.bf16.vlgmr.msra.gmra.mrb[20].mxu1 %vm444_vm1, %v1079_v16 }
 0x5db   : > { %1722 = shalt.err (!%p1719_p11)
}
 0x5dc   : > { %s1723_s22 = scalar_lea.hbm %s2228_s7, 512  ;;  %s1727_s1 = scalar_lea.hbm %s2366_s18, 1024 }
 0x5dd   : > { %p1724_p0 = scmp.ne.s32.totalorder %s2228_s7, %s1723_s22  ;;  %p1728_p8 = scmp.lt.u32.totalorder %s2228_s7, %s2366_s18 }
 0x5de   : > { %p1729_p1 = scmp.lt.u32.totalorder %s1727_s1, %s1723_s22  ;;  %p1731_p4 = scmp.lt.u32.totalorder %s1723_s22, %s2228_s7 }
 0x5df   : > { %p1725_p13 = pnand %p1724_p0, %p2367_p9 }
 0x5e0   : > { %p1730_p2 = por %p1729_p1, %p1728_p8 }
 0x5e1   : > { %p1726_p10 = pneg %p1725_p13 }
 0x5e2   : > { %p1732_p12 = por %p1731_p4, %p1730_p2 }
 0x5e4   : > { %p1733_p6 = pnand %p1732_p12, %p1726_p10 }
 0x5e6   : > { %1736 = shalt.err (!%p1733_p6)
}
 0x5e7   : > { %s1834_s17 = smov 128   ;;  %s2368_s23 = sld [smem:[#allocation25_spill]] }
 0x5e8   : > { %1497 = dma.vmem_to_hbm [thread:$0]  (%p2367_p9), %s2230_s16, 512, %s2228_s7, %s1148_s8, %s1834_s17, %s1834_s17, %s1830_s12  }
 0x5e9   : > { %s1372_s19 = sshll.u32 %s1971_s24, 7  ;;  %s410_s20 = scalar_lea.vmem [#allocation10], %s2095_s9 }
 0x5ea   : > { %s1161_s6 = sshll.u32 %s410_s20, 4  ;;  %s2369_s22 = sld [smem:[#allocation26_spill]]  ;;  %s2267_s6 = int_to_ptr.vmem [resolvable:$true] %s1161_s6 }
 0x5eb   : > { %s1143_s24 = scalar_lea.sflag [#allocation4], %s2092_s25  ;;  %s1737_s9 = scalar_lea.vmem %s2267_s6, 128 }
 0x5ec   : > { %p1738_p3 = scmp.ne.s32.totalorder %s2267_s6, %s1737_s9  ;;  %s1835_s12 = smov [#allocation10]  }
 0x5ed   : > { %v1366_v17 = vld [vmem:[%s2368_s23] ss:$0 sm:$0xff]  ;;  %s1741_s16 = sshll.u32 %s1835_s12, 4  ;;  %s1742_s16 = int_to_ptr.vmem [resolvable:$false] %s1741_s16 }
 0x5ee   : > { %p1739_p5 = pnand %p1738_p3, %p2367_p9  ;;  %s1743_s7 = scalar_lea.vmem %s1742_s16, 256 }
 0x5ef   : > { %p1744_p11 = scmp.lt.s32.totalorder %s2267_s6, %s1742_s16  ;;  %p1745_p0 = scmp.lt.s32.totalorder %s1743_s7, %s1737_s9 }
 0x5f0   : > { %s2265_s26 = scalar_lea.hbm %s2369_s22, %s1372_s19  ;;  %p1740_p7 = pneg %p1739_p5 }
 0x5f1   : > { %p1746_p13 = por %p1745_p0, %p1744_p11 }
 0x5f3   : > { %p1747_p10 = pnand %p1746_p13, %p1740_p7 }
 0x6ad   : > { %v1135_v18 = vpop.f32.mrb[20].mxu1 }
 0x6ae   : > { %v1136_v19 = vadd.f32 %v1366_v17, %v1135_v18  ;;  %v1484_v20 = vpop.f32.mrb[21].mxu1 }
 0x6af   : > { %v1138_v21 = vpop.f32.mrb[22].mxu1 }
 0x6b0   : > { %v1485_v22 = vpop.f32.mrb[23].mxu1  ;;  %1141 = vst.msk [vmem:[%s410_s20] sm:$0xff] %vm444_vm1, %v1136_v19 }
 0x6b1   : > { %1750 = shalt.err (!%p1747_p10)
}
 0x6b2   : > { %s1751_s25 = scalar_lea.hbm %s2265_s26, 128  ;;  %s1755_s1 = scalar_lea.hbm %s2369_s22, 256 }
 0x6b3   : > { %p1752_p8 = scmp.ne.s32.totalorder %s2265_s26, %s1751_s25  ;;  %p1756_p4 = scmp.lt.u32.totalorder %s2265_s26, %s2369_s22 }
 0x6b4   : > { %p1757_p12 = scmp.lt.u32.totalorder %s1755_s1, %s1751_s25  ;;  %p1759_p3 = scmp.lt.u32.totalorder %s1751_s25, %s2265_s26 }
 0x6b5   : > { %p1753_p1 = pnand %p1752_p8, %p2367_p9 }
 0x6b6   : > { %p1758_p6 = por %p1757_p12, %p1756_p4 }
 0x6b7   : > { %p1754_p2 = pneg %p1753_p1 }
 0x6b8   : > { %p1760_p5 = por %p1759_p3, %p1758_p6 }
 0x6ba   : > { %p1761_p7 = pnand %p1760_p5, %p1754_p2 }
 0x6bc   : > { %1764 = shalt.err (!%p1761_p7)
}
 0x6bd   : > { %1496 = dma.vmem_to_hbm [thread:$0]  (%p2367_p9), %s2267_s6, 128, %s2265_s26, %s1143_s24  }
 0x6be PF: > { %s2370_s17 = sld [smem:[#allocation18_spill]]  ;;  %s2371_s13 = sld [smem:[#allocation23_spill]] }
 0x6bf   : > { %s2372_s30 = sld [smem:[#allocation19_spill]] }
 0x6c4   : > { %s1189_s23 = sand.u32 1, %s2370_s17   ;;  %p2373_p11 = scmp.ne.s32.totalorder %s2371_s13, 0 }
 0x6c5   : > { %p2374_p0 = scmp.ge.s32.totalorder %s2372_s30, 2  ;;  %s1190_s19 = scalar_lea.sflag [#allocation4], %s1189_s23 }
 0x6c7   : > { %p1515_p13 = pnand %p2374_p0, %p2373_p11 }
 0x6c9   : > { %1794 = dma.done.wait (!%p1515_p13), %s1190_s19, 128  }
 0x6ca   : > { %1796 = vsyncadd (!%p1515_p13), %s1190_s19, 4294967168  ;;  %s1199_s20 = scalar_lea.sflag [#allocation12], %s1189_s23 }
 0x6cb   : > { %1798 = dma.done.wait (!%p1515_p13), %s1199_s20, 512  }
 0x6cc   : > { %1800 = vsyncadd (!%p1515_p13), %s1199_s20, 4294966784  ;;  %s2375_s30 = sld [smem:[#allocation20_spill]]  ;;  %s2376_s21 = sld [smem:[#allocation21_spill]] }
 0x6cd   : > { %s2377_s27 = smov %s1807_s28  ;;  %s2378_s28 = smov %s1811_s29 }
 0x6d2   : > { %p29_p9 = scmp.ge.s32.totalorder %s2375_s30, 4   ;;  %s2379_s29 = smov %s2376_s21 }
 0x6d4   :  { %31 = sbr.rel (!%p29_p9) target bundleno = 15 (0xf), region = 141 }
 0x6db   :  { %1204 = vsyncpa [#allocation3], 1 }
 0x6dc   :  { %1206 = vsyncpa [#allocation3 + $0x1], 1 }
 0x6dd   :  { %1207 = vsyncpa [#allocation6], 1 }
 0x6de   :  { %1209 = vsyncpa [#allocation6 + $0x1], 1 }
 0x6df   :  { %1210 = vsyncpa [#allocation9], 1 }
 0x6e0   :  { %1211 = vsyncpa [#allocation4], 1 }
 0x6e1   :  { %1213 = vsyncpa [#allocation4 + $0x1], 1 }
 0x6e2   :  { %1214 = vsyncpa [#allocation12], 1 }
 0x6e3   :  { %1216 = vsyncpa [#allocation12 + $0x1], 1 }

</bundles_post_ra>
